<compile_context>
chip_gen: v5e
topology: v5e:2x2
jax: 0.10.0
libtpu: 0.0.40
codegen_flags: <defaults>
</compile_context>

<pallas_src>
import jax
import jax.numpy as jnp
from jax.experimental import pallas as pl
from jax.experimental.pallas import tpu as pltpu

# ---- small, deterministic problem sizes (consistent with the forward) ------
B, C_IN, H, W = 2, 4, 16, 16
C_OUT = 32
KH = KW = 3
PAD = 1
HW = H * W                    # 256 pixels per image
BHW = B * HW                  # 512
KDIM = KH * KW * C_IN         # 36 real contraction rows
KB = KDIM + 1                 # 37: +1 ones column that carries the conv bias
C_PAD = 128                   # output channels zero-padded to a full lane tile
CHUNK = 128                   # rows of the conv matmul processed per step
N_CHUNKS = HW // CHUNK        # 2 chunks per image


# ---------------------------- Pallas kernel ---------------------------------
def encoder_kernel(patches_ref, w_ref, o_ref):
    # patches_ref: (HW, KB)      one image's im2col rows (+ ones bias column)
    # w_ref:       (KB, C_PAD)   conv weight, row KDIM = bias, padded lanes = 0
    # o_ref:       (1, 8, C_PAD) pooled features, broadcast across 8 sublanes
    w = w_ref[...]

    def chunk_body(c, acc):
        start = pl.multiple_of(c * CHUNK, CHUNK)
        rows = patches_ref[pl.ds(start, CHUNK), :]               # (CHUNK, KB)
        act = jnp.maximum(
            jnp.dot(rows, w, preferred_element_type=jnp.float32), 0.0)  # MXU+VPU
        return acc + jnp.sum(act, axis=0, keepdims=True)         # partial GAP sum

    pooled = jax.lax.fori_loop(0, N_CHUNKS, chunk_body,
                               jnp.zeros((1, C_PAD), jnp.float32),
                               unroll=True)
    pooled = pooled * (1.0 / HW)                                 # finish the mean
    o_ref[...] = jnp.broadcast_to(pooled, (1, 8, C_PAD)).astype(o_ref.dtype)


# ------------------------------ glue / wrapper -------------------------------
def _im2col_with_bias(x_nchw):
    """(B,C_IN,H,W) -> (B*HW, KB): 'same'-padded 3x3 patches in (kh,kw,cin)
    order plus a trailing ones column that carries the conv bias."""
    x = jnp.transpose(x_nchw, (0, 2, 3, 1))                      # NHWC
    xp = jnp.pad(x, ((0, 0), (PAD, PAD), (PAD, PAD), (0, 0)))
    cols = [xp[:, kh:kh + H, kw:kw + W, :]
            for kh in range(KH) for kw in range(KW)]             # 9 x (B,H,W,C_IN)
    patches = jnp.concatenate(cols, axis=-1).reshape(BHW, KDIM)
    ones = jnp.ones((BHW, 1), jnp.float32)
    return jnp.concatenate([patches, ones], axis=-1)             # (BHW, KB)


@jax.jit
def input_img_encoder(x_nchw, w_conv, b_conv):
    """x_nchw: (B, C_IN, H, W) float32 -> (B, C_OUT) float32."""
    patches = _im2col_with_bias(x_nchw)                          # (BHW, 37)

    # torch conv weight (C_OUT, C_IN, KH, KW) -> rows ordered (kh, kw, cin);
    # row KDIM pairs with the ones column and carries the bias; output
    # channels zero-padded to a full 128-lane tile (padded lanes stay 0
    # through ReLU and pooling, sliced off below).
    w_flat = jnp.transpose(w_conv, (2, 3, 1, 0)).reshape(KDIM, C_OUT)
    w_pad = (jnp.zeros((KB, C_PAD), jnp.float32)
             .at[:KDIM, :C_OUT].set(w_flat)
             .at[KDIM, :C_OUT].set(b_conv))
    # TODO(synk): at realistic H/W/C, build the patches inside the kernel from
    # the zero-padded NHWC tile (9 shifted slices in VMEM) instead of a
    # wrapper im2col; at 16x16x4 the wrapper fusions are already tiny.

    out = pl.pallas_call(
        encoder_kernel,
        out_shape=jax.ShapeDtypeStruct((B, 8, C_PAD), jnp.float32),
        grid=(B,),                                               # one image / step
        in_specs=[
            pl.BlockSpec((HW, KB), lambda b: (b, 0)),            # this image's rows
            pl.BlockSpec((KB, C_PAD), lambda b: (0, 0)),         # shared weight
        ],
        out_specs=pl.BlockSpec((1, 8, C_PAD), lambda b: (b, 0, 0)),
        compiler_params=pltpu.CompilerParams(
            dimension_semantics=("parallel",)),                  # v7x: 1 image / TC
    )(patches, w_pad)

    # torch.flatten(x, 1) after AdaptiveAvgPool2d(1): drop padding -> (B, C_OUT)
    return out[:, 0, :C_OUT]


# --------------------------- pure-JAX reference ------------------------------
def reference(x_nchw, w_conv, b_conv):
    conv = jax.lax.conv_general_dilated(
        x_nchw, w_conv, window_strides=(1, 1),
        padding=((PAD, PAD), (PAD, PAD)),
        dimension_numbers=("NCHW", "OIHW", "NCHW"))
    act = jnp.maximum(conv + b_conv[None, :, None, None], 0.0)
    return act.mean(axis=(2, 3))                                 # (B, C_OUT)


if __name__ == "__main__":
    key = jax.random.PRNGKey(0)
    kx, kw, kb = jax.random.split(key, 3)
    x = jax.random.normal(kx, (B, C_IN, H, W), dtype=jnp.float32)
    w_conv = jax.random.normal(kw, (C_OUT, C_IN, KH, KW), dtype=jnp.float32) * 0.1
    b_conv = jax.random.normal(kb, (C_OUT,), dtype=jnp.float32) * 0.1

    out = jax.block_until_ready(input_img_encoder(x, w_conv, b_conv))

    ref = reference(x, w_conv, b_conv)
    assert out.shape == (B, C_OUT), out.shape
    assert jnp.allclose(out, ref, rtol=1e-3, atol=1e-3), \
        float(jnp.max(jnp.abs(out - ref)))
    print("KERNEL_OK")
</pallas_src>

<mosaic_0001>
module attributes {stable_mosaic.version = 11 : i64} {
  func.func @encoder_kernel(%arg0: i32, %arg1: memref<256x37xf32, #tpu.memory_space<vmem>>, %arg2: memref<37x128xf32, #tpu.memory_space<vmem>>, %arg3: memref<1x8x128xf32, #tpu.memory_space<vmem>>) attributes {dimension_semantics = [#tpu.dimension_semantics<parallel>], iteration_bounds = array<i64: 2>, scalar_prefetch = 0 : i64, scratch_operands = 0 : i64, tpu.core_type = #tpu.core_type<tc>, window_params = [{transform_indices = @transform_0, window_bounds = array<i64: 256, 37>}, {pipeline_mode = #tpu.pipeline_mode<synchronous>, transform_indices = @transform_1, window_bounds = array<i64: 37, 128>}, {transform_indices = @transform_2, window_bounds = array<i64: 1, 8, 128>}]} {
    %c0 = arith.constant 0 : index
    %c0_0 = arith.constant 0 : index
    %0 = vector.load %arg2[%c0, %c0_0] : memref<37x128xf32, #tpu.memory_space<vmem>>, vector<37x128xf32>
    %cst = arith.constant 0.000000e+00 : f32
    %1 = vector.broadcast %cst : f32 to vector<1x128xf32>
    %c0_i32 = arith.constant 0 : i32
    %c128_i32 = arith.constant 128 : i32
    %2 = arith.muli %c0_i32, %c128_i32 : i32
    %3 = tpu.assume_multiple %2, 128 : i32
    %4 = arith.index_cast %3 : i32 to index
    %c0_1 = arith.constant 0 : index
    %5 = vector.load %arg1[%4, %c0_1] : memref<256x37xf32, #tpu.memory_space<vmem>>, vector<128x37xf32>
    %cst_2 = arith.constant dense<0.000000e+00> : vector<128x128xf32>
    %6 = tpu.matmul %5, %0, %cst_2 {dimension_numbers = #tpu.dot_dimension_numbers<[1], [0], [0], [1], [0, 0, 1, 1], [], []>} : vector<128x37xf32>, vector<37x128xf32>, vector<128x128xf32> -> vector<128x128xf32>
    %cst_3 = arith.constant 0.000000e+00 : f32
    %7 = vector.broadcast %cst_3 : f32 to vector<128x128xf32>
    %8 = arith.maximumf %6, %7 : vector<128x128xf32>
    %cst_4 = arith.constant dense<0.000000e+00> : vector<128xf32>
    %9 = vector.multi_reduction <add>, %8, %cst_4 [0] : vector<128x128xf32> to vector<128xf32>
    %10 = vector.shape_cast %9 : vector<128xf32> to vector<1x128xf32>
    %11 = arith.addf %1, %10 : vector<1x128xf32>
    %c1_i32 = arith.constant 1 : i32
    %c128_i32_5 = arith.constant 128 : i32
    %12 = arith.muli %c1_i32, %c128_i32_5 : i32
    %13 = tpu.assume_multiple %12, 128 : i32
    %14 = arith.index_cast %13 : i32 to index
    %c0_6 = arith.constant 0 : index
    %15 = vector.load %arg1[%14, %c0_6] : memref<256x37xf32, #tpu.memory_space<vmem>>, vector<128x37xf32>
    %cst_7 = arith.constant dense<0.000000e+00> : vector<128x128xf32>
    %16 = tpu.matmul %15, %0, %cst_7 {dimension_numbers = #tpu.dot_dimension_numbers<[1], [0], [0], [1], [0, 0, 1, 1], [], []>} : vector<128x37xf32>, vector<37x128xf32>, vector<128x128xf32> -> vector<128x128xf32>
    %cst_8 = arith.constant 0.000000e+00 : f32
    %17 = vector.broadcast %cst_8 : f32 to vector<128x128xf32>
    %18 = arith.maximumf %16, %17 : vector<128x128xf32>
    %cst_9 = arith.constant dense<0.000000e+00> : vector<128xf32>
    %19 = vector.multi_reduction <add>, %18, %cst_9 [0] : vector<128x128xf32> to vector<128xf32>
    %20 = vector.shape_cast %19 : vector<128xf32> to vector<1x128xf32>
    %21 = arith.addf %11, %20 : vector<1x128xf32>
    %c2_i32 = arith.constant 2 : i32
    %cst_10 = arith.constant 3.906250e-03 : f32
    %22 = vector.broadcast %cst_10 : f32 to vector<1x128xf32>
    %23 = arith.mulf %21, %22 : vector<1x128xf32>
    %24 = vector.shape_cast %23 : vector<1x128xf32> to vector<1x1x128xf32>
    %25 = vector.broadcast %24 : vector<1x1x128xf32> to vector<1x8x128xf32>
    %c0_11 = arith.constant 0 : index
    %c0_12 = arith.constant 0 : index
    %c0_13 = arith.constant 0 : index
    %26 = vector.load %arg3[%c0_11, %c0_12, %c0_13] : memref<1x8x128xf32, #tpu.memory_space<vmem>>, vector<1x8x128xf32>
    tpu.vector_store %arg3[%c0_11, %c0_12, %c0_13], %25 {strides = array<i32>} : memref<1x8x128xf32, #tpu.memory_space<vmem>>, vector<1x8x128xf32>,
    return
  }
  func.func @transform_0(%arg0: i32) -> (i32, i32) {
    %c0_i32 = arith.constant 0 : i32
    %c0_i32_0 = arith.constant 0 : i32
    return %arg0, %c0_i32 : i32, i32
  }
  func.func @transform_1(%arg0: i32) -> (i32, i32) {
    %c0_i32 = arith.constant 0 : i32
    %c0_i32_0 = arith.constant 0 : i32
    %c0_i32_1 = arith.constant 0 : i32
    return %c0_i32, %c0_i32_0 : i32, i32
  }
  func.func @transform_2(%arg0: i32) -> (i32, i32, i32) {
    %c0_i32 = arith.constant 0 : i32
    %c0_i32_0 = arith.constant 0 : i32
    %c0_i32_1 = arith.constant 0 : i32
    return %arg0, %c0_i32, %c0_i32_0 : i32, i32, i32
  }
}

</mosaic_0001>

<bundles_post_ra>
// kernel: input_img_encoder.1
= control target key start
LH: loop header
LB: loop body
LE: loop exit
PB: predicated region body
PF: predicated region fallthrough
CT: control target
= control target key end

     0   :  { %s645_s9 = smov 0   ;;  %s751_s0 = inlined_call_operand.vmem [shape: f32[512,37], index: 0, kind: input, shape index: {}]   ;;  %s752_s1 = inlined_call_operand.vmem [shape: f32[37,128], index: 1, kind: input, shape index: {}]   ;;  %s753_s2 = inlined_call_operand.vmem [shape: f32[2,8,128], index: 2, kind: output, shape index: {}]  }
   0x1 LB: > { %s651_s10 = sadd.s32 4294967295, %s628_s9   ;;  %p548_p0 = scmp.ge.s32.totalorder %s628_s9, 1  ;;  %s628_s9 = sphi %s645_s9, %s12_s9  }
   0x2   : > { %p113_p1 = scmp.lt.s32.totalorder %s628_s9, 3 }
   0x4   : > { %p114_p2 = pnand %p548_p0, %p113_p1 }
   0x5   : > { %s549_s15 = sshll.u32 (!%p114_p2), %s651_s10, 5  ;;  %p140_p4 = scmp.lt.s32.totalorder (!%p114_p2), %s651_s10, 1 }
   0x6   : > { %117 = sbr.rel (%p114_p2) target bundleno = 240 (0xf0), region = 28  ;;  %p135_p3 = scmp.lt.s32.totalorder (!%p114_p2), %s549_s15, 63 }
   0xb   : > { %v148_v0 = vld [vmem:[%s752_s1 + $0x20] sm:$0x1f]  ;;  %vm214_vm0 = vcmask 1044480   ;;  %v147_v1 = vld [vmem:[%s752_s1 + $0x18] sm:$0xff]  ;;  %v146_v2 = vld [vmem:[%s752_s1 + $0x10] sm:$0xff]  ;;  %s755_s15 = smov (!%p135_p3, %s549_s15), 63 }
   0xc   : > { %552 = vmatpush.msk.msra.mxu0 %vm214_vm0, %v148_v0  ;;  %585 = vmatpush.msk.msra.mxu1 %vm214_vm0, %v148_v0  ;;  %v145_v3 = vld [vmem:[%s752_s1 + $0x8] sm:$0xff]  ;;  %s550_s20 = sshll.u32 %s755_s15, 3  ;;  %v144_v4 = vld [vmem:[%s752_s1] sm:$0xff]  ;;  %vm165_vm1 = vcmask 302080   ;;  %s757_s10 = smov (!%p140_p4, %s651_s10), 1 }
   0xd   : > { %604 = vmatpush.msk.msra.mxu2 %vm214_vm0, %v148_v0  ;;  %609 = vmatpush.msk.msra.mxu3 %vm214_vm0, %v148_v0  ;;  %s674_s25 = scalar_lea.vmem %s751_s0, %s550_s20  ;;  %s551_s26 = sshll.u32 %s757_s10, 3 }
   0xe   : > { %230 = vmatpush.msra.mxu0 %v147_v1  ;;  %398 = vmatpush.msra.mxu1 %v147_v1  ;;  %v149_v5 = vld [vmem:[%s674_s25] sm:$0xff]  ;;  %v150_v9 = vld [vmem:[%s674_s25 + $0x8] sm:$0xff]  ;;  %v151_v13 = vld [vmem:[%s674_s25 + $0x10] sm:$0xff]  ;;  %s143_s29 = scalar_lea.vmem %s753_s2, %s551_s26 }
   0xf   : > { %605 = vmatpush.msra.mxu2 %v147_v1  ;;  %610 = vmatpush.msra.mxu3 %v147_v1  ;;  %v569_v6 = vld [vmem:[%s674_s25 + $0x80] sm:$0xff]  ;;  %v570_v10 = vld [vmem:[%s674_s25 + $0x88] sm:$0xff]  ;;  %v571_v14 = vld [vmem:[%s674_s25 + $0x90] sm:$0xff] }
  0x10   : > { %231 = vmatpush.msra.mxu0 %v146_v2  ;;  %399 = vmatpush.msra.mxu1 %v146_v2  ;;  %v157_v7 = vld [vmem:[%s674_s25 + $0x40] sm:$0xff]  ;;  %v158_v11 = vld [vmem:[%s674_s25 + $0x48] sm:$0xff]  ;;  %v159_v15 = vld [vmem:[%s674_s25 + $0x50] sm:$0xff] }
  0x11   : > { %606 = vmatpush.msra.mxu2 %v146_v2  ;;  %611 = vmatpush.msra.mxu3 %v146_v2  ;;  %v577_v8 = vld [vmem:[%s674_s25 + $0xc0] sm:$0xff]  ;;  %v578_v12 = vld [vmem:[%s674_s25 + $0xc8] sm:$0xff]  ;;  %v579_v16 = vld [vmem:[%s674_s25 + $0xd0] sm:$0xff] }
  0x12   : > { %232 = vmatpush.msra.mxu0 %v145_v3  ;;  %400 = vmatpush.msra.mxu1 %v145_v3  ;;  %v152_v17 = vld [vmem:[%s674_s25 + $0x18] sm:$0xff]  ;;  %v153_v21 = vld [vmem:[%s674_s25 + $0x20] sm:$0xff]  ;;  %v154_v25 = vld [vmem:[%s674_s25 + $0x28] sm:$0xff] }
  0x13   : > { %607 = vmatpush.msra.mxu2 %v145_v3  ;;  %612 = vmatpush.msra.mxu3 %v145_v3  ;;  %v572_v18 = vld [vmem:[%s674_s25 + $0x98] sm:$0xff]  ;;  %v573_v22 = vld [vmem:[%s674_s25 + $0xa0] sm:$0xff]  ;;  %v574_v26 = vld [vmem:[%s674_s25 + $0xa8] sm:$0xff] }
  0x14   : > { %233 = vmatpush.msra.mxu0 %v144_v4  ;;  %401 = vmatpush.msra.mxu1 %v144_v4  ;;  %v160_v19 = vld [vmem:[%s674_s25 + $0x58] sm:$0xff]  ;;  %v161_v23 = vld [vmem:[%s674_s25 + $0x60] sm:$0xff]  ;;  %v162_v27 = vld [vmem:[%s674_s25 + $0x68] sm:$0xff] }
  0x15   : > { %553 = vmatmul.msk.f32.vlgmr.msra.gmra.mxu0 %vm165_vm1, %v149_v5  ;;  %586 = vmatmul.msk.f32.vlgmr.msra.gmra.mxu1 %vm165_vm1, %v569_v6  ;;  %v580_v20 = vld [vmem:[%s674_s25 + $0xd8] sm:$0xff]  ;;  %v581_v24 = vld [vmem:[%s674_s25 + $0xe0] sm:$0xff]  ;;  %v582_v28 = vld [vmem:[%s674_s25 + $0xe8] sm:$0xff] }
  0x16   : > { %608 = vmatpush.msra.mxu2 %v144_v4  ;;  %613 = vmatpush.msra.mxu3 %v144_v4  ;;  %v155_v29 = vld [vmem:[%s674_s25 + $0x30] sm:$0xff]  ;;  %v156_v33 = vld [vmem:[%s674_s25 + $0x38] sm:$0xff] }
  0x17   : > { %561 = vmatmul.msk.f32.vlgmr.msra.gmra.mxu2 %vm165_vm1, %v157_v7  ;;  %594 = vmatmul.msk.f32.vlgmr.msra.gmra.mxu3 %vm165_vm1, %v577_v8  ;;  %v575_v30 = vld [vmem:[%s674_s25 + $0xb0] sm:$0xff]  ;;  %v576_v34 = vld [vmem:[%s674_s25 + $0xb8] sm:$0xff] }
  0x18   : > { %v163_v31 = vld [vmem:[%s674_s25 + $0x70] sm:$0xff]  ;;  %v164_v35 = vld [vmem:[%s674_s25 + $0x78] sm:$0xff] }
  0x19   : > { %v583_v32 = vld [vmem:[%s674_s25 + $0xf0] sm:$0xff]  ;;  %v584_v36 = vld [vmem:[%s674_s25 + $0xf8] sm:$0xff] }
  0x1d   : > { %554 = vmatmul.msk.f32.gmra.mxu0 %vm165_vm1, %v150_v9  ;;  %587 = vmatmul.msk.f32.gmra.mxu1 %vm165_vm1, %v570_v10 }
  0x1f   : > { %562 = vmatmul.msk.f32.gmra.mxu2 %vm165_vm1, %v158_v11  ;;  %595 = vmatmul.msk.f32.gmra.mxu3 %vm165_vm1, %v578_v12 }
  0x25   : > { %555 = vmatmul.msk.f32.gmra.mxu0 %vm165_vm1, %v151_v13  ;;  %588 = vmatmul.msk.f32.gmra.mxu1 %vm165_vm1, %v571_v14 }
  0x27   : > { %563 = vmatmul.msk.f32.gmra.mxu2 %vm165_vm1, %v159_v15  ;;  %596 = vmatmul.msk.f32.gmra.mxu3 %vm165_vm1, %v579_v16 }
  0x2d   : > { %556 = vmatmul.msk.f32.gmra.mxu0 %vm165_vm1, %v152_v17  ;;  %589 = vmatmul.msk.f32.gmra.mxu1 %vm165_vm1, %v572_v18 }
  0x2f   : > { %564 = vmatmul.msk.f32.gmra.mxu2 %vm165_vm1, %v160_v19  ;;  %597 = vmatmul.msk.f32.gmra.mxu3 %vm165_vm1, %v580_v20 }
  0x35   : > { %557 = vmatmul.msk.f32.gmra.mxu0 %vm165_vm1, %v153_v21  ;;  %590 = vmatmul.msk.f32.gmra.mxu1 %vm165_vm1, %v573_v22 }
  0x37   : > { %565 = vmatmul.msk.f32.gmra.mxu2 %vm165_vm1, %v161_v23  ;;  %598 = vmatmul.msk.f32.gmra.mxu3 %vm165_vm1, %v581_v24 }
  0x3d   : > { %558 = vmatmul.msk.f32.gmra.mxu0 %vm165_vm1, %v154_v25  ;;  %591 = vmatmul.msk.f32.gmra.mxu1 %vm165_vm1, %v574_v26 }
  0x3f   : > { %566 = vmatmul.msk.f32.gmra.mxu2 %vm165_vm1, %v162_v27  ;;  %599 = vmatmul.msk.f32.gmra.mxu3 %vm165_vm1, %v582_v28 }
  0x45   : > { %559 = vmatmul.msk.f32.gmra.mxu0 %vm165_vm1, %v155_v29  ;;  %592 = vmatmul.msk.f32.gmra.mxu1 %vm165_vm1, %v575_v30 }
  0x47   : > { %567 = vmatmul.msk.f32.gmra.mxu2 %vm165_vm1, %v163_v31  ;;  %600 = vmatmul.msk.f32.gmra.mxu3 %vm165_vm1, %v583_v32 }
  0x4d   : > { %560 = vmatmul.msk.f32.gmra.mxu0 %vm165_vm1, %v156_v33  ;;  %593 = vmatmul.msk.f32.gmra.mxu1 %vm165_vm1, %v576_v34 }
  0x4f   : > { %568 = vmatmul.msk.f32.gmra.mxu2 %vm165_vm1, %v164_v35  ;;  %601 = vmatmul.msk.f32.gmra.mxu3 %vm165_vm1, %v584_v36 }
  0x92   : > { %v235_v37 = vpop.f32.mrf.mxu0  ;;  %v403_v38 = vpop.f32.mrf.mxu1 }
  0x93   : > { %v283_v61 = vmax.f32 %v235_v37, 0.0  ;;  %v451_v62 = vmax.f32 %v403_v38, 0.0 }
  0x9a   : > { %v238_v39 = vpop.f32.mrf.mxu0  ;;  %v406_v40 = vpop.f32.mrf.mxu1 }
  0x9b   : > { %v259_v41 = vpop.f32.mrf.mxu2  ;;  %v427_v42 = vpop.f32.mrf.mxu3  ;;  %v284_v59 = vmax.f32 %v238_v39, 0.0  ;;  %v452_v60 = vmax.f32 %v406_v40, 0.0 }
  0x9c   : > { %v291_v31 = vmax.f32 %v259_v41, 0.0  ;;  %v459_v32 = vmax.f32 %v427_v42, 0.0 }
  0x9d   : > { %v299_v1 = vadd.f32 %v284_v59, %v283_v61  ;;  %v467_v2 = vadd.f32 %v452_v60, %v451_v62 }
  0xa2   : > { %v241_v43 = vpop.f32.mrf.mxu0  ;;  %v409_v44 = vpop.f32.mrf.mxu1 }
  0xa3   : > { %v262_v45 = vpop.f32.mrf.mxu2  ;;  %v430_v46 = vpop.f32.mrf.mxu3  ;;  %v285_v63 = vmax.f32 %v241_v43, 0.0  ;;  %v453_v0 = vmax.f32 %v409_v44, 0.0 }
  0xa4   : > { %v292_v35 = vmax.f32 %v262_v45, 0.0  ;;  %v460_v36 = vmax.f32 %v430_v46, 0.0 }
  0xa5   : > { %v300_v7 = vadd.f32 %v299_v1, %v285_v63  ;;  %v468_v8 = vadd.f32 %v467_v2, %v453_v0 }
  0xaa   : > { %v244_v47 = vpop.f32.mrf.mxu0  ;;  %v412_v48 = vpop.f32.mrf.mxu1 }
  0xab   : > { %v265_v49 = vpop.f32.mrf.mxu2  ;;  %v433_v50 = vpop.f32.mrf.mxu3  ;;  %v286_v3 = vmax.f32 %v244_v47, 0.0  ;;  %v454_v4 = vmax.f32 %v412_v48, 0.0 }
  0xac   : > { %v293_v39 = vmax.f32 %v265_v49, 0.0  ;;  %v461_v40 = vmax.f32 %v433_v50, 0.0 }
  0xad   : > { %v301_v13 = vadd.f32 %v300_v7, %v286_v3  ;;  %v469_v14 = vadd.f32 %v468_v8, %v454_v4 }
  0xb2   : > { %v247_v51 = vpop.f32.mrf.mxu0  ;;  %v415_v52 = vpop.f32.mrf.mxu1 }
  0xb3   : > { %v268_v53 = vpop.f32.mrf.mxu2  ;;  %v436_v54 = vpop.f32.mrf.mxu3  ;;  %v287_v9 = vmax.f32 %v247_v51, 0.0  ;;  %v455_v10 = vmax.f32 %v415_v52, 0.0 }
  0xb4   : > { %v294_v47 = vmax.f32 %v268_v53, 0.0  ;;  %v462_v48 = vmax.f32 %v436_v54, 0.0 }
  0xb5   : > { %v302_v17 = vadd.f32 %v301_v13, %v287_v9  ;;  %v470_v18 = vadd.f32 %v469_v14, %v455_v10 }
  0xba   : > { %v250_v55 = vpop.f32.mrf.mxu0  ;;  %v418_v56 = vpop.f32.mrf.mxu1 }
  0xbb   : > { %v271_v57 = vpop.f32.mrf.mxu2  ;;  %v740_v58 = vpop.f32.mrf.mxu3  ;;  %v288_v15 = vmax.f32 %v250_v55, 0.0  ;;  %v456_v16 = vmax.f32 %v418_v56, 0.0 }
  0xbc   : > { %v295_v55 = vmax.f32 %v271_v57, 0.0  ;;  %v463_v56 = vmax.f32 %v740_v58, 0.0 }
  0xbd   : > { %v303_v21 = vadd.f32 %v302_v17, %v288_v15  ;;  %v471_v22 = vadd.f32 %v470_v18, %v456_v16 }
  0xc2   : > { %v253_v5 = vpop.f32.mrf.mxu0  ;;  %v421_v6 = vpop.f32.mrf.mxu1 }
  0xc3   : > { %v274_v11 = vpop.f32.mrf.mxu2  ;;  %v442_v12 = vpop.f32.mrf.mxu3  ;;  %v289_v19 = vmax.f32 %v253_v5, 0.0  ;;  %v457_v20 = vmax.f32 %v421_v6, 0.0 }
  0xc4   : > { %v296_v61 = vmax.f32 %v274_v11, 0.0  ;;  %v464_v46 = vmax.f32 %v442_v12, 0.0 }
  0xc5   : > { %v304_v25 = vadd.f32 %v303_v21, %v289_v19  ;;  %v472_v26 = vadd.f32 %v471_v22, %v457_v20 }
  0xca   : > { %v256_v23 = vpop.f32.mrf.mxu0  ;;  %v424_v24 = vpop.f32.mrf.mxu1 }
  0xcb   : > { %v290_v27 = vmax.f32 %v256_v23, 0.0  ;;  %v458_v28 = vmax.f32 %v424_v24, 0.0  ;;  %v277_v29 = vpop.f32.mrf.mxu2  ;;  %v445_v30 = vpop.f32.mrf.mxu3 }
  0xcc   : > { %v297_v49 = vmax.f32 %v277_v29, 0.0  ;;  %v465_v50 = vmax.f32 %v445_v30, 0.0 }
  0xcd   : > { %v305_v33 = vadd.f32 %v304_v25, %v290_v27  ;;  %v473_v34 = vadd.f32 %v472_v26, %v458_v28 }
  0xcf   : > { %v306_v37 = vadd.f32 %v305_v33, %v291_v31  ;;  %v474_v38 = vadd.f32 %v473_v34, %v459_v32 }
  0xd1   : > { %v307_v43 = vadd.f32 %v306_v37, %v292_v35  ;;  %v475_v44 = vadd.f32 %v474_v38, %v460_v36 }
  0xd3   : > { %v308_v51 = vadd.f32 %v307_v43, %v293_v39  ;;  %v476_v52 = vadd.f32 %v475_v44, %v461_v40  ;;  %v280_v42 = vpop.f32.mrf.mxu2  ;;  %v448_v60 = vpop.f32.mrf.mxu3 }
  0xd4   : > { %v298_v54 = vmax.f32 %v280_v42, 0.0  ;;  %v466_v0 = vmax.f32 %v448_v60, 0.0 }
  0xd5   : > { %v309_v59 = vadd.f32 %v308_v51, %v294_v47  ;;  %v477_v41 = vadd.f32 %v476_v52, %v462_v48 }
  0xd7   : > { %v310_v45 = vadd.f32 %v309_v59, %v295_v55  ;;  %v478_v62 = vadd.f32 %v477_v41, %v463_v56 }
  0xd9   : > { %v311_v63 = vadd.f32 %v310_v45, %v296_v61  ;;  %v479_v53 = vadd.f32 %v478_v62, %v464_v46 }
  0xdb   : > { %v312_v1 = vadd.f32 %v311_v63, %v297_v49  ;;  %v480_v57 = vadd.f32 %v479_v53, %v465_v50 }
  0xdd   : > { %v313_v2 = vadd.f32 %v312_v1, %v298_v54  ;;  %v481_v58 = vadd.f32 %v480_v57, %v466_v0 }
  0xdf   : > { %v314_v3 = vrot.slane %v313_v2, 4  ;;  %v482_v4 = vrot.slane %v481_v58, 4 }
  0xe1   : > { %v315_v5 = vadd.f32 %v314_v3, %v313_v2  ;;  %v483_v6 = vadd.f32 %v482_v4, %v481_v58 }
  0xe3   : > { %v316_v7 = vrot.slane %v315_v5, 2  ;;  %v484_v8 = vrot.slane %v483_v6, 2 }
  0xe5   : > { %v317_v9 = vadd.f32 %v316_v7, %v315_v5  ;;  %v485_v10 = vadd.f32 %v484_v8, %v483_v6 }
  0xe7   : > { %v318_v11 = vrot.slane %v317_v9, 1  ;;  %v486_v12 = vrot.slane %v485_v10, 1 }
  0xe9   : > { %v319_v13 = vadd.f32 %v318_v11, %v317_v9  ;;  %v487_v14 = vadd.f32 %v486_v12, %v485_v10 }
  0xeb   : > { %v488_v15 = vadd.f32 %v487_v14, %v319_v13 }
  0xed   : > { %v489_v16 = vmul.f32 0.00390625, %v488_v15 }
  0xef   : > { %490 = vst [vmem:[%s143_s29] sm:$0xff] %v489_v16 }
  0xf0 PF: > { %s12_s9 = sadd.s32 1, %s628_s9  }
  0xf1   : > { %p9_p5 = scmp.ge.s32.totalorder %s12_s9, 4  }
  0xf3   :  { %11 = sbr.rel (!%p9_p5) target bundleno = 1 (0x1), region = 59 }

</bundles_post_ra>
